<compile_context>
chip_gen: v6e
topology: v6e:2x2x1
jax: 0.10.0
libtpu: 0.0.40
codegen_flags: <defaults>
</compile_context>

<pallas_src>
import jax
import jax.numpy as jnp
from jax import lax
from jax.experimental import pallas as pl
from jax.experimental.pallas import tpu as pltpu


def _round_up(x: int, m: int) -> int:
    return (x + m - 1) // m * m


def _onehot_gather_kernel(idx_ref, w_ref, o_ref):
    # idx_ref: (tile_s, 1) int32 VMEM block of (clamped) prompt ids.
    # w_ref:   (P_pad, embed_size) full embedding table, resident in VMEM.
    # o_ref:   (tile_s, embed_size) output block.
    idx = idx_ref[...]                                     # (tile_s, 1)
    tile_s = idx.shape[0]
    p_pad = w_ref.shape[0]
    iota = lax.broadcasted_iota(jnp.int32, (tile_s, p_pad), 1)
    onehot = (iota == idx).astype(w_ref.dtype)             # (tile_s, P_pad)
    o_ref[...] = jnp.dot(
        onehot, w_ref[...], preferred_element_type=jnp.float32
    ).astype(o_ref.dtype)


def prompt_embedding_lookup(table: jax.Array, indices: jax.Array) -> jax.Array:
    """Pallas embedding gather: out[i, :] = table[indices[i], :]."""
    prompt_length, embed_size = table.shape
    (seq,) = indices.shape

    table_bytes = prompt_length * embed_size * table.dtype.itemsize
    if table_bytes > 40 * 1024 * 1024:
        # TODO(synk): K-chunk the resident table (stream prompt_length tiles)
        # for very large tables instead of falling back to XLA's gather.
        return jnp.take(table, jnp.clip(indices, 0, prompt_length - 1), axis=0)

    # Sublane-dense output tile: multiple of 8 rows, capped at 128.
    tile_s = min(_round_up(seq, 8), 128)
    seq_pad = _round_up(seq, tile_s)
    # Lane-dense one-hot contraction dim.
    p_pad = _round_up(prompt_length, 128)

    # Clamp ids (nn.Embedding assumes valid ids; avoid any OOB behaviour).
    idx = jnp.clip(indices.astype(jnp.int32), 0, prompt_length - 1)
    idx = jnp.pad(idx, (0, seq_pad - seq)).reshape(seq_pad, 1)

    table_p = table
    if p_pad != prompt_length:
        table_p = jnp.pad(table, ((0, p_pad - prompt_length), (0, 0)))

    # VMEM budget: resident table + double-buffered out/idx tiles + one-hot.
    itemsize = table_p.dtype.itemsize
    vmem_bytes = (
        p_pad * embed_size * itemsize
        + 2 * tile_s * embed_size * itemsize
        + 2 * tile_s * 4
        + tile_s * p_pad * 4
    )
    vmem_limit = min(max(vmem_bytes + (8 << 20), 32 << 20), 64 << 20)

    out = pl.pallas_call(
        _onehot_gather_kernel,
        out_shape=jax.ShapeDtypeStruct((seq_pad, embed_size), table.dtype),
        grid_spec=pltpu.PrefetchScalarGridSpec(
            num_scalar_prefetch=0,
            grid=(seq_pad // tile_s,),
            in_specs=[
                # Per-tile indices (sublane-dense int32 column).
                pl.BlockSpec((tile_s, 1), lambda i: (i, 0)),
                # Whole table as one block: DMA'd once, stays resident.
                pl.BlockSpec((p_pad, embed_size), lambda i: (0, 0)),
            ],
            out_specs=pl.BlockSpec((tile_s, embed_size), lambda i: (i, 0)),
        ),
        compiler_params=pltpu.CompilerParams(
            dimension_semantics=("parallel",),
            vmem_limit_bytes=vmem_limit,
        ),
    )(idx, table_p)
    return out[:seq]


class ContinuousPromptJAX:
    """JAX/Pallas port of ContinuousPrompt: holds the prompt embedding table."""

    def __init__(self, config_dict, init_embedding=None, *, key=None):
        self.prompt_length = config_dict["prompt_len"]
        self.embed_size = config_dict["embed_size"]
        self.hidden_size = self.embed_size
        if init_embedding is not None:
            # Preserve the checkpoint dtype (no silent upcast to f32).
            self.prompt_embeddings = jnp.asarray(init_embedding)
        else:
            # nn.Embedding default init: N(0, 1), deterministic here.
            key = jax.random.PRNGKey(0) if key is None else key
            self.prompt_embeddings = jax.random.normal(
                key, (self.prompt_length, self.embed_size), dtype=jnp.float32
            )

    def __call__(self, indices: jax.Array) -> jax.Array:
        return prompt_embedding_lookup(self.prompt_embeddings, indices)


if __name__ == "__main__":
    # Small, TPU-friendly shapes: prompt_len=16, embed_size=128, seq=8.
    config = {"prompt_len": 16, "embed_size": 128}
    key = jax.random.PRNGKey(0)
    k_tab, k_idx = jax.random.split(key)

    model = ContinuousPromptJAX(config, key=k_tab)
    indices = jax.random.randint(
        k_idx, (8,), minval=0, maxval=config["prompt_len"], dtype=jnp.int32
    )

    out = model(indices)
    out = jax.block_until_ready(out)

    # Sanity check against the plain-JAX reference gather.
    ref = jnp.take(model.prompt_embeddings, indices, axis=0)
    assert out.shape == (8, config["embed_size"])
    assert bool(jnp.allclose(out, ref)), "Pallas gather mismatch vs jnp.take"

    print("KERNEL_OK")
</pallas_src>

<mosaic_0001>
module attributes {stable_mosaic.version = 11 : i64} {
  func.func @_onehot_gather_kernel(%arg0: i32, %arg1: memref<8x1xi32, #tpu.memory_space<vmem>>, %arg2: memref<128x128xf32, #tpu.memory_space<vmem>>, %arg3: memref<8x128xf32, #tpu.memory_space<vmem>>) attributes {dimension_semantics = [#tpu.dimension_semantics<parallel>], iteration_bounds = array<i64: 1>, scalar_prefetch = 0 : i64, scratch_operands = 0 : i64, tpu.core_type = #tpu.core_type<tc>, window_params = [{transform_indices = @transform_0, window_bounds = array<i64: 8, 1>}, {pipeline_mode = #tpu.pipeline_mode<synchronous>, transform_indices = @transform_1, window_bounds = array<i64: 128, 128>}, {transform_indices = @transform_2, window_bounds = array<i64: 8, 128>}]} {
    %c0 = arith.constant 0 : index
    %c0_0 = arith.constant 0 : index
    %0 = vector.load %arg1[%c0, %c0_0] : memref<8x1xi32, #tpu.memory_space<vmem>>, vector<8x1xi32>
    %1 = tpu.iota {dimensions = array<i32: 1>} : vector<8x128xi32>
    %2 = vector.broadcast %0 : vector<8x1xi32> to vector<8x128xi32>
    %3 = arith.cmpi eq, %1, %2 : vector<8x128xi32>
    %4 = arith.extui %3 : vector<8x128xi1> to vector<8x128xi32>
    %5 = arith.sitofp %4 : vector<8x128xi32> to vector<8x128xf32>
    %c0_1 = arith.constant 0 : index
    %c0_2 = arith.constant 0 : index
    %6 = vector.load %arg2[%c0_1, %c0_2] : memref<128x128xf32, #tpu.memory_space<vmem>>, vector<128x128xf32>
    %cst = arith.constant dense<0.000000e+00> : vector<8x128xf32>
    %7 = tpu.matmul %5, %6, %cst {dimension_numbers = #tpu.dot_dimension_numbers<[1], [0], [0], [1], [0, 0, 1, 1], [], []>} : vector<8x128xf32>, vector<128x128xf32>, vector<8x128xf32> -> vector<8x128xf32>
    %c0_3 = arith.constant 0 : index
    %c0_4 = arith.constant 0 : index
    %8 = vector.load %arg3[%c0_3, %c0_4] : memref<8x128xf32, #tpu.memory_space<vmem>>, vector<8x128xf32>
    tpu.vector_store %arg3[%c0_3, %c0_4], %7 {strides = array<i32>} : memref<8x128xf32, #tpu.memory_space<vmem>>, vector<8x128xf32>,
    return
  }
  func.func @transform_0(%arg0: i32) -> (i32, i32) {
    %c0_i32 = arith.constant 0 : i32
    %c0_i32_0 = arith.constant 0 : i32
    return %arg0, %c0_i32 : i32, i32
  }
  func.func @transform_1(%arg0: i32) -> (i32, i32) {
    %c0_i32 = arith.constant 0 : i32
    %c0_i32_0 = arith.constant 0 : i32
    %c0_i32_1 = arith.constant 0 : i32
    return %c0_i32, %c0_i32_0 : i32, i32
  }
  func.func @transform_2(%arg0: i32) -> (i32, i32) {
    %c0_i32 = arith.constant 0 : i32
    %c0_i32_0 = arith.constant 0 : i32
    return %arg0, %c0_i32 : i32, i32
  }
}

</mosaic_0001>

<bundles_post_ra>
// kernel: tpu_custom_call.1
= control target key start
LH: loop header
LB: loop body
LE: loop exit
PB: predicated region body
PF: predicated region fallthrough
CT: control target
= control target key end

     0   :  { %7 = vsyncpa [#allocation3], 0  ;;  %s276_s0 = inlined_call_operand.vmem [shape: s32[8,1], index: 0, kind: input, shape index: {}]   ;;  %s277_s1 = inlined_call_operand.hbm [shape: f32[128,128], index: 1, kind: input, shape index: {}]   ;;  %s278_s2 = inlined_call_operand.hbm [shape: f32[8,128], index: 2, kind: output, shape index: {}]  }
   0x1   :  { %8 = vsyncpa [#allocation4], 0  ;;  %s244_s9 = smov [#allocation2]  }
   0x2   :  { %s16_s10 = sshll.u32 %s244_s9, 4  ;;  %s17_s10 = int_to_ptr.vmem [resolvable:$true] %s16_s10 }
   0x3   :  { %s208_s11 = scalar_lea.vmem %s17_s10, 2048  ;;  %p213_p1 = scmp.lt.s32.totalorder %s17_s10, %s17_s10 }
   0x4   :  { %p209_p0 = scmp.ne.s32.totalorder %s17_s10, %s208_s11  ;;  %p214_p2 = scmp.lt.s32.totalorder %s208_s11, %s208_s11 }
   0x6   :  { %p215_p3 = por %p214_p2, %p213_p1 }
   0x8   :  { %p216_p4 = pnand %p215_p3, %p209_p0 }
   0xa   :  { %219 = shalt.err (!%p216_p4)
}
   0xb   :  { %s245_s12 = smov 128   ;;  %s246_s13 = smov 8  }
   0xc   :  { %22 = dma.hbm_to_vmem [thread:$0]  %s277_s1, 2048, %s17_s10, [#allocation3], %s245_s12, %s245_s12, %s246_s13  }
   0xd   :  { %240 = dma.done.wait [#allocation3], 2048  }
   0xe   :  { %241 = vsyncadd [#allocation3], 4294965248  ;;  %v247_v0 = vmov 0   ;;  %v248_v1 = vmov 0.0   ;;  %vm249_vm0 = vmmov 0   ;;  %v26_v2 = vld [vmem:[%s276_s0] sm:$0xff]  ;;  %v27_v19 = vlaneseq }
   0xf   :  { %199 = vset.pattern.permute.xlu0 %v247_v0  ;;  %156 = vmatprep.subr.mxu0 %v248_v1  ;;  %v50_v3 = vld [vmem:[#allocation2 + $0x78] sm:$0xff]  ;;  %v49_v4 = vld [vmem:[#allocation2 + $0x70] sm:$0xff]  ;;  %v48_v5 = vld [vmem:[#allocation2 + $0x68] sm:$0xff]  ;;  %v250_v22 = vmov 1.0   ;;  %s251_s0 = smov [#allocation5]  }
  0x10   :  { %188 = vmatprep.mubr.msk.f32.mxu0 %vm249_vm0, %v248_v1  ;;  %30 = vperm.xlu0 %199, %v26_v2   ;;  %v47_v6 = vld [vmem:[#allocation2 + $0x60] sm:$0xff]  ;;  %v46_v7 = vld [vmem:[#allocation2 + $0x58] sm:$0xff]  ;;  %v45_v8 = vld [vmem:[#allocation2 + $0x50] sm:$0xff]  ;;  %v28_v20 = vand.u32 127, %v27_v19  ;;  %s128_s1 = sshll.u32 %s251_s0, 4  ;;  %s129_s1 = int_to_ptr.vmem [resolvable:$true] %s128_s1 }
  0x11   :  { %157 = vmatpush3.msra.mxu0 %v50_v3  ;;  %v44_v9 = vld [vmem:[#allocation2 + $0x48] sm:$0xff]  ;;  %v43_v10 = vld [vmem:[#allocation2 + $0x40] sm:$0xff]  ;;  %v42_v11 = vld [vmem:[#allocation2 + $0x38] sm:$0xff]  ;;  %s220_s18 = scalar_lea.vmem %s129_s1, 128  ;;  %p225_p6 = scmp.lt.s32.totalorder %s129_s1, %s129_s1 }
  0x12   :  { %158 = vmatprep.subr.mxu0 %v248_v1  ;;  %v41_v12 = vld [vmem:[#allocation2 + $0x30] sm:$0xff]  ;;  %v40_v13 = vld [vmem:[#allocation2 + $0x28] sm:$0xff]  ;;  %v39_v14 = vld [vmem:[#allocation2 + $0x20] sm:$0xff]  ;;  %p221_p5 = scmp.ne.s32.totalorder %s129_s1, %s220_s18  ;;  %p226_p7 = scmp.lt.s32.totalorder %s220_s18, %s220_s18 }
  0x13   :  { %159 = vmatpush3.msra.mxu0 %v49_v4  ;;  %v38_v15 = vld [vmem:[#allocation2 + $0x18] sm:$0xff]  ;;  %v37_v16 = vld [vmem:[#allocation2 + $0x10] sm:$0xff]  ;;  %v36_v17 = vld [vmem:[#allocation2 + $0x8] sm:$0xff] }
  0x14   :  { %160 = vmatprep.subr.mxu0 %v248_v1  ;;  %v35_v18 = vld [vmem:[#allocation2] sm:$0xff]  ;;  %p227_p8 = por %p226_p7, %p225_p6 }
  0x15   :  { %161 = vmatpush3.msra.mxu0 %v48_v5 }
  0x16   :  { %162 = vmatprep.subr.mxu0 %v248_v1  ;;  %p228_p9 = pnand %p227_p8, %p221_p5 }
  0x17   :  { %163 = vmatpush3.msra.mxu0 %v47_v6 }
  0x18   :  { %164 = vmatprep.subr.mxu0 %v248_v1 }
  0x19   :  { %165 = vmatpush3.msra.mxu0 %v46_v7 }
  0x1a   :  { %166 = vmatprep.subr.mxu0 %v248_v1 }
  0x1b   :  { %167 = vmatpush3.msra.mxu0 %v45_v8 }
  0x1c   :  { %168 = vmatprep.subr.mxu0 %v248_v1 }
  0x1d   :  { %169 = vmatpush3.msra.mxu0 %v44_v9 }
  0x1e   :  { %170 = vmatprep.subr.mxu0 %v248_v1 }
  0x1f   :  { %171 = vmatpush3.msra.mxu0 %v43_v10 }
  0x20   :  { %172 = vmatprep.subr.mxu0 %v248_v1 }
  0x21   :  { %173 = vmatpush3.msra.mxu0 %v42_v11 }
  0x22   :  { %174 = vmatprep.subr.mxu0 %v248_v1 }
  0x23   :  { %175 = vmatpush3.msra.mxu0 %v41_v12 }
  0x24   :  { %176 = vmatprep.subr.mxu0 %v248_v1 }
  0x25   :  { %177 = vmatpush3.msra.mxu0 %v40_v13 }
  0x26   :  { %178 = vmatprep.subr.mxu0 %v248_v1 }
  0x27   :  { %179 = vmatpush3.msra.mxu0 %v39_v14 }
  0x28   :  { %180 = vmatprep.subr.mxu0 %v248_v1 }
  0x29   :  { %181 = vmatpush3.msra.mxu0 %v38_v15 }
  0x2a   :  { %182 = vmatprep.subr.mxu0 %v248_v1 }
  0x2b   :  { %183 = vmatpush3.msra.mxu0 %v37_v16 }
  0x2c   :  { %184 = vmatprep.subr.mxu0 %v248_v1 }
  0x2d   :  { %185 = vmatpush3.msra.mxu0 %v36_v17 }
  0x2e   :  { %186 = vmatprep.subr.mxu0 %v248_v1 }
  0x2f   :  { %187 = vmatpush3.msra.mxu0 %v35_v18 }
  0x8b   :  { %v31_v21 = vpop.permute.xlu0 %30 }
  0x8c   :  { %vm32_vm1 = vcmp.eq.s32.totalorder %v28_v20, %v31_v21 }
  0x8d   :  { %189 = vmatmul.mubr.msk.f32.vlgmr.msra.gmra.mxu0 %vm32_vm1, %v250_v22 }
 0x14d   :  { %v117_v23 = vpop.f32.mrf.mxu0 }
 0x14e   :  { %121 = vst [vmem:[#allocation5] sm:$0xff] %v117_v23 }
 0x14f   :  { %v190_v24 = vpop.f32.mrf.mxu0 }
 0x150   :  { %231 = shalt.err (!%p228_p9)
}
 0x151   :  { %131 = dma.vmem_to_hbm [thread:$0]  %s129_s1, 128, %s278_s2, [#allocation4]  }
 0x152   :  { %242 = dma.done.wait [#allocation4], 128  }
 0x153   :  { %243 = vsyncadd [#allocation4], 4294967168 }
 0x154   :  { %135 = vsyncpa [#allocation3], 1 }
 0x155   :  { %136 = vsyncpa [#allocation4], 1 }

</bundles_post_ra>
